<compile_context>
chip_gen: v6e
topology: v6e:2x2x1
jax: 0.10.0
libtpu: 0.0.40
codegen_flags: <defaults>
</compile_context>

<pallas_src>
import functools
import math

import jax
import jax.numpy as jnp
from jax.experimental import pallas as pl
from jax.experimental.pallas import tpu as pltpu


def _round_up(n, m):
    return ((n + m - 1) // m) * m


# --------------------------------------------------------------------------
# Fused kernel: all layers in one body, activations never leave VMEM/vregs.
# --------------------------------------------------------------------------
def _fused_lipmlp_kernel(x_ref, *refs, num_layers):
    """x_ref : [bm, din]           f32 batch tile
    refs  : (wt_0, b_0, ..., wt_{L-1}, b_{L-1}, o_ref)
            wt_l : [in_l, dout_pad_l]  bf16, scale pre-folded, zero padded
            b_l  : [1, dout_pad_l]     f32, zero padded
            o_ref: [bm, dout_pad_last] f32
    """
    o_ref = refs[-1]
    act = x_ref[...]                                   # f32
    for l in range(num_layers):                        # unrolled at trace time
        wt = refs[2 * l][...]                          # bf16 [in_l, dout_p]
        b = refs[2 * l + 1][...]                       # f32  [1, dout_p]
        y = jnp.dot(act.astype(jnp.bfloat16), wt,
                    preferred_element_type=jnp.float32)  # MXU, f32 accumulate
        y = y + b
        if l < num_layers - 1:
            y = jnp.maximum(y, 0.0)                    # ReLU (hidden layers)
        act = y
    o_ref[...] = act                                   # lane-dense store


# --------------------------------------------------------------------------
# Parameter init (mirrors LipschitzLinear.initialize_parameters)
# --------------------------------------------------------------------------
def init_lipschitz_linear(key, in_features, out_features):
    stdv = 1.0 / math.sqrt(in_features)
    kw, kb = jax.random.split(key)
    weight = jax.random.uniform(
        kw, (out_features, in_features), minval=-stdv, maxval=stdv,
        dtype=jnp.float32)
    bias = jax.random.uniform(
        kb, (out_features,), minval=-stdv, maxval=stdv, dtype=jnp.float32)
    c = jnp.max(jnp.sum(jnp.abs(weight), axis=1)).reshape(1)
    return {"weight": weight, "bias": bias, "c": c}


def init_lip_mlp(key, dims, init_s=2.3):
    """dims[0]=input dim, dims[1:-1]=hidden, dims[-1]=output. len(dims) >= 3."""
    keys = jax.random.split(key, len(dims) - 1)
    layers = [init_lipschitz_linear(keys[i], dims[i], dims[i + 1])
              for i in range(len(dims) - 2)]
    layer_output = init_lipschitz_linear(keys[-1], dims[-2], dims[-1])
    s = jnp.array([init_s], dtype=jnp.float32)
    return {"layers": layers, "layer_output": layer_output, "s": s}


# --------------------------------------------------------------------------
# One-time prep: compute Lipschitz scale in f32, fold into weights, transpose,
# zero-pad output dims to 128 lanes, cast weights to bf16.
# --------------------------------------------------------------------------
def prepare_lip_mlp_params(params, weight_dtype=jnp.bfloat16):
    all_layers = list(params["layers"]) + [params["layer_output"]]
    wb = []
    in_cols = all_layers[0]["weight"].shape[1]   # first layer keeps raw din
    for lyr in all_layers:
        dout, din = lyr["weight"].shape
        # Lipschitz normalization in f32, exactly as the PyTorch forward does.
        lipc = jax.nn.softplus(lyr["c"][0])
        abs_row_sum = jnp.sum(jnp.abs(lyr["weight"]), axis=1)
        scale = jnp.minimum(lipc / abs_row_sum, 1.0)
        w_eff = lyr["weight"] * scale[:, None]                 # [dout, din] f32
        dout_p = _round_up(dout, 128)
        wt = jnp.zeros((in_cols, dout_p), jnp.float32)
        wt = wt.at[:din, :dout].set(w_eff.T)                   # W_eff^T, padded
        b = jnp.zeros((1, dout_p), jnp.float32).at[0, :dout].set(lyr["bias"])
        wb.append((wt.astype(weight_dtype), b))
        in_cols = dout_p                                       # next layer in-dim
    return {
        "wb": wb,
        "din": all_layers[0]["weight"].shape[1],
        "dout": all_layers[-1]["weight"].shape[0],
        "s": params["s"],
    }


# --------------------------------------------------------------------------
# Forward
# --------------------------------------------------------------------------
def _choose_bm(B):
    if B <= 512:
        return _round_up(max(B, 8), 8)          # one resident tile
    # Large batch: MXU-aligned tile (multiple of 256 for v6e/v7x, 128 for v5e)
    # and guaranteed >= 2 tiles so the parallel axis shards across v7x's 2 TCs.
    return 512


def lip_mlp_forward(prep, x):
    """LipMLP.forward: returns (output, clamp(exp(s), 0.001, 1000))."""
    B, din = x.shape
    assert din == prep["din"]
    num_layers = len(prep["wb"])
    dout_p = prep["wb"][-1][0].shape[1]

    bm = _choose_bm(B)
    B_p = _round_up(B, bm)
    if B_p != B:
        # TODO(synk): for large ragged B, pre-pad batches upstream (once) to
        # avoid this per-call copy.
        x = jnp.pad(x, ((0, B_p - B), (0, 0)))

    flat_wb = [arr for pair in prep["wb"] for arr in pair]

    in_specs = [pl.BlockSpec((bm, din), lambda i: (i, 0))]
    for wt, b in prep["wb"]:
        # Constant block index -> weights/biases stay VMEM-resident across
        # batch tiles (no re-DMA).
        in_specs.append(pl.BlockSpec(wt.shape, lambda i: (0, 0)))
        in_specs.append(pl.BlockSpec(b.shape, lambda i: (0, 0)))
    out_spec = pl.BlockSpec((bm, dout_p), lambda i: (i, 0))

    # Advisory cost estimate + explicit VMEM budget.
    flops = 2 * B_p * sum(wt.shape[0] * wt.shape[1] for wt, _ in prep["wb"])
    resident = sum(wt.size * wt.dtype.itemsize + b.size * b.dtype.itemsize
                   for wt, b in prep["wb"])
    io_bytes = B_p * din * 4 + resident + B_p * dout_p * 4
    tile_bytes = bm * din * 4 + bm * dout_p * 4
    vmem_limit = min(64 << 20, max(32 << 20, 2 * (resident + tile_bytes) + (1 << 20)))

    kernel = functools.partial(_fused_lipmlp_kernel, num_layers=num_layers)

    out_pad = pl.pallas_call(
        kernel,
        out_shape=jax.ShapeDtypeStruct((B_p, dout_p), jnp.float32),
        grid_spec=pltpu.PrefetchScalarGridSpec(
            num_scalar_prefetch=0,
            grid=(B_p // bm,),
            in_specs=in_specs,
            out_specs=out_spec,
        ),
        compiler_params=pltpu.CompilerParams(
            dimension_semantics=("parallel",),
            vmem_limit_bytes=int(vmem_limit)),
        cost_estimate=pl.CostEstimate(
            flops=int(flops), transcendentals=0, bytes_accessed=int(io_bytes)),
    )(x, *flat_wb)

    # Narrow dout slice; for large B the consumer should take this lazily.
    out = out_pad[:B, :prep["dout"]]
    # scalar epilogue (not a hot path) kept in plain JAX
    s_out = jnp.clip(jnp.exp(prep["s"]), 0.001, 1000.0)
    return out, s_out


# --------------------------------------------------------------------------
# Pure-JAX reference (matches the PyTorch module semantics, f32)
# --------------------------------------------------------------------------
def lip_mlp_reference(params, x):
    def layer(p, x, relu):
        lipc = jax.nn.softplus(p["c"][0])
        scale = jnp.minimum(lipc / jnp.sum(jnp.abs(p["weight"]), axis=1), 1.0)
        y = x @ (p["weight"] * scale[:, None]).T + p["bias"]
        return jnp.maximum(y, 0.0) if relu else y

    for lyr in params["layers"]:
        x = layer(lyr, x, True)
    out = layer(params["layer_output"], x, False)
    s_out = jnp.clip(jnp.exp(params["s"]), 0.001, 1000.0)
    return out, s_out


# TODO(synk): get_lipschitz_loss() (product of softplus(c) over layers) is a
# training-time scalar reduction; left in plain JAX if ever needed.

if __name__ == "__main__":
    key = jax.random.PRNGKey(0)
    k_params, k_x = jax.random.split(key)

    # dims: input=16, hidden=(64, 64), output=8 ; batch=32
    dims = (16, 64, 64, 8)
    batch = 32

    params = init_lip_mlp(k_params, dims, init_s=2.3)
    prep = prepare_lip_mlp_params(params)          # bf16 weights, scale folded
    x = jax.random.normal(k_x, (batch, dims[0]), dtype=jnp.float32)

    out, s_out = lip_mlp_forward(prep, x)
    out = jax.block_until_ready(out)
    s_out = jax.block_until_ready(s_out)

    # sanity-check against pure-JAX f32 reference (bf16 MXU path -> loose tol)
    ref_out, ref_s = lip_mlp_reference(params, x)
    assert out.shape == (batch, dims[-1])
    assert s_out.shape == (1,)
    assert jnp.allclose(out, ref_out, atol=3e-2, rtol=3e-2), (
        float(jnp.max(jnp.abs(out - ref_out))))
    assert jnp.allclose(s_out, ref_s, atol=1e-6, rtol=1e-6)

    print("KERNEL_OK")
</pallas_src>

<mosaic_0001>
module attributes {stable_mosaic.version = 11 : i64} {
  func.func @_fused_lipmlp_kernel(%arg0: i32, %arg1: memref<32x16xf32, #tpu.memory_space<vmem>>, %arg2: memref<16x128xbf16, #tpu.memory_space<vmem>>, %arg3: memref<1x128xf32, #tpu.memory_space<vmem>>, %arg4: memref<128x128xbf16, #tpu.memory_space<vmem>>, %arg5: memref<1x128xf32, #tpu.memory_space<vmem>>, %arg6: memref<128x128xbf16, #tpu.memory_space<vmem>>, %arg7: memref<1x128xf32, #tpu.memory_space<vmem>>, %arg8: memref<32x128xf32, #tpu.memory_space<vmem>>) attributes {dimension_semantics = [#tpu.dimension_semantics<parallel>], iteration_bounds = array<i64: 1>, scalar_prefetch = 0 : i64, scratch_operands = 0 : i64, tpu.core_type = #tpu.core_type<tc>, window_params = [{transform_indices = @transform_0, window_bounds = array<i64: 32, 16>}, {pipeline_mode = #tpu.pipeline_mode<synchronous>, transform_indices = @transform_1, window_bounds = array<i64: 16, 128>}, {pipeline_mode = #tpu.pipeline_mode<synchronous>, transform_indices = @transform_2, window_bounds = array<i64: 1, 128>}, {pipeline_mode = #tpu.pipeline_mode<synchronous>, transform_indices = @transform_3, window_bounds = array<i64: 128, 128>}, {pipeline_mode = #tpu.pipeline_mode<synchronous>, transform_indices = @transform_4, window_bounds = array<i64: 1, 128>}, {pipeline_mode = #tpu.pipeline_mode<synchronous>, transform_indices = @transform_5, window_bounds = array<i64: 128, 128>}, {pipeline_mode = #tpu.pipeline_mode<synchronous>, transform_indices = @transform_6, window_bounds = array<i64: 1, 128>}, {transform_indices = @transform_7, window_bounds = array<i64: 32, 128>}]} {
    %c0 = arith.constant 0 : index
    %c0_0 = arith.constant 0 : index
    %0 = vector.load %arg1[%c0, %c0_0] : memref<32x16xf32, #tpu.memory_space<vmem>>, vector<32x16xf32>
    %c0_1 = arith.constant 0 : index
    %c0_2 = arith.constant 0 : index
    %1 = vector.load %arg2[%c0_1, %c0_2] : memref<16x128xbf16, #tpu.memory_space<vmem>>, vector<16x128xbf16>
    %c0_3 = arith.constant 0 : index
    %c0_4 = arith.constant 0 : index
    %2 = vector.load %arg3[%c0_3, %c0_4] : memref<1x128xf32, #tpu.memory_space<vmem>>, vector<1x128xf32>
    %3 = arith.truncf %0 : vector<32x16xf32> to vector<32x16xbf16>
    %cst = arith.constant dense<0.000000e+00> : vector<32x128xf32>
    %4 = tpu.matmul %3, %1, %cst {dimension_numbers = #tpu.dot_dimension_numbers<[1], [0], [0], [1], [0, 0, 1, 1], [], []>} : vector<32x16xbf16>, vector<16x128xbf16>, vector<32x128xf32> -> vector<32x128xf32>
    %5 = vector.broadcast %2 : vector<1x128xf32> to vector<32x128xf32>
    %6 = arith.addf %4, %5 : vector<32x128xf32>
    %cst_5 = arith.constant 0.000000e+00 : f32
    %7 = vector.broadcast %cst_5 : f32 to vector<32x128xf32>
    %8 = arith.maximumf %6, %7 : vector<32x128xf32>
    %c0_6 = arith.constant 0 : index
    %c0_7 = arith.constant 0 : index
    %9 = vector.load %arg4[%c0_6, %c0_7] : memref<128x128xbf16, #tpu.memory_space<vmem>>, vector<128x128xbf16>
    %c0_8 = arith.constant 0 : index
    %c0_9 = arith.constant 0 : index
    %10 = vector.load %arg5[%c0_8, %c0_9] : memref<1x128xf32, #tpu.memory_space<vmem>>, vector<1x128xf32>
    %11 = arith.truncf %8 : vector<32x128xf32> to vector<32x128xbf16>
    %cst_10 = arith.constant dense<0.000000e+00> : vector<32x128xf32>
    %12 = tpu.matmul %11, %9, %cst_10 {dimension_numbers = #tpu.dot_dimension_numbers<[1], [0], [0], [1], [0, 0, 1, 1], [], []>} : vector<32x128xbf16>, vector<128x128xbf16>, vector<32x128xf32> -> vector<32x128xf32>
    %13 = vector.broadcast %10 : vector<1x128xf32> to vector<32x128xf32>
    %14 = arith.addf %12, %13 : vector<32x128xf32>
    %cst_11 = arith.constant 0.000000e+00 : f32
    %15 = vector.broadcast %cst_11 : f32 to vector<32x128xf32>
    %16 = arith.maximumf %14, %15 : vector<32x128xf32>
    %c0_12 = arith.constant 0 : index
    %c0_13 = arith.constant 0 : index
    %17 = vector.load %arg6[%c0_12, %c0_13] : memref<128x128xbf16, #tpu.memory_space<vmem>>, vector<128x128xbf16>
    %c0_14 = arith.constant 0 : index
    %c0_15 = arith.constant 0 : index
    %18 = vector.load %arg7[%c0_14, %c0_15] : memref<1x128xf32, #tpu.memory_space<vmem>>, vector<1x128xf32>
    %19 = arith.truncf %16 : vector<32x128xf32> to vector<32x128xbf16>
    %cst_16 = arith.constant dense<0.000000e+00> : vector<32x128xf32>
    %20 = tpu.matmul %19, %17, %cst_16 {dimension_numbers = #tpu.dot_dimension_numbers<[1], [0], [0], [1], [0, 0, 1, 1], [], []>} : vector<32x128xbf16>, vector<128x128xbf16>, vector<32x128xf32> -> vector<32x128xf32>
    %21 = vector.broadcast %18 : vector<1x128xf32> to vector<32x128xf32>
    %22 = arith.addf %20, %21 : vector<32x128xf32>
    %c0_17 = arith.constant 0 : index
    %c0_18 = arith.constant 0 : index
    %23 = vector.load %arg8[%c0_17, %c0_18] : memref<32x128xf32, #tpu.memory_space<vmem>>, vector<32x128xf32>
    tpu.vector_store %arg8[%c0_17, %c0_18], %22 {strides = array<i32>} : memref<32x128xf32, #tpu.memory_space<vmem>>, vector<32x128xf32>,
    return
  }
  func.func @transform_0(%arg0: i32) -> (i32, i32) {
    %c0_i32 = arith.constant 0 : i32
    %c0_i32_0 = arith.constant 0 : i32
    return %arg0, %c0_i32 : i32, i32
  }
  func.func @transform_1(%arg0: i32) -> (i32, i32) {
    %c0_i32 = arith.constant 0 : i32
    %c0_i32_0 = arith.constant 0 : i32
    %c0_i32_1 = arith.constant 0 : i32
    return %c0_i32, %c0_i32_0 : i32, i32
  }
  func.func @transform_2(%arg0: i32) -> (i32, i32) {
    %c0_i32 = arith.constant 0 : i32
    %c0_i32_0 = arith.constant 0 : i32
    %c0_i32_1 = arith.constant 0 : i32
    return %c0_i32, %c0_i32_0 : i32, i32
  }
  func.func @transform_3(%arg0: i32) -> (i32, i32) {
    %c0_i32 = arith.constant 0 : i32
    %c0_i32_0 = arith.constant 0 : i32
    %c0_i32_1 = arith.constant 0 : i32
    return %c0_i32, %c0_i32_0 : i32, i32
  }
  func.func @transform_4(%arg0: i32) -> (i32, i32) {
    %c0_i32 = arith.constant 0 : i32
    %c0_i32_0 = arith.constant 0 : i32
    %c0_i32_1 = arith.constant 0 : i32
    return %c0_i32, %c0_i32_0 : i32, i32
  }
  func.func @transform_5(%arg0: i32) -> (i32, i32) {
    %c0_i32 = arith.constant 0 : i32
    %c0_i32_0 = arith.constant 0 : i32
    %c0_i32_1 = arith.constant 0 : i32
    return %c0_i32, %c0_i32_0 : i32, i32
  }
  func.func @transform_6(%arg0: i32) -> (i32, i32) {
    %c0_i32 = arith.constant 0 : i32
    %c0_i32_0 = arith.constant 0 : i32
    %c0_i32_1 = arith.constant 0 : i32
    return %c0_i32, %c0_i32_0 : i32, i32
  }
  func.func @transform_7(%arg0: i32) -> (i32, i32) {
    %c0_i32 = arith.constant 0 : i32
    %c0_i32_0 = arith.constant 0 : i32
    return %arg0, %c0_i32 : i32, i32
  }
}

</mosaic_0001>

<bundles_post_ra>
// kernel: tpu_custom_call.1
= control target key start
LH: loop header
LB: loop body
LE: loop exit
PB: predicated region body
PF: predicated region fallthrough
CT: control target
= control target key end

     0   :  { %12 = vsyncpa [#allocation3], 0  ;;  %s668_s0 = inlined_call_operand.vmem [shape: f32[32,16], index: 0, kind: input, shape index: {}]   ;;  %s669_s1 = inlined_call_operand.vmem [shape: bf16[16,128], index: 1, kind: input, shape index: {}]   ;;  %s670_s2 = inlined_call_operand.vmem [shape: f32[1,128], index: 2, kind: input, shape index: {}]   ;;  %s671_s3 = inlined_call_operand.hbm [shape: bf16[128,128], index: 3, kind: input, shape index: {}]   ;;  %s672_s4 = inlined_call_operand.vmem [shape: f32[1,128], index: 4, kind: input, shape index: {}]   ;;  %s673_s5 = inlined_call_operand.hbm [shape: bf16[128,128], index: 5, kind: input, shape index: {}]   ;;  %s674_s6 = inlined_call_operand.vmem [shape: f32[1,128], index: 6, kind: input, shape index: {}]   ;;  %s675_s7 = inlined_call_operand.hbm [shape: f32[32,128], index: 7, kind: output, shape index: {}]  }
   0x1   :  { %13 = vsyncpa [#allocation6], 0 }
   0x2   :  { %14 = vsyncpa [#allocation4], 0  ;;  %s588_s24 = smov [#allocation2]  }
   0x3   :  { %s26_s25 = sshll.u32 %s588_s24, 4  ;;  %s27_s25 = int_to_ptr.vmem [resolvable:$true] %s26_s25 }
   0x4   :  { %s530_s26 = scalar_lea.vmem %s27_s25, 1024  ;;  %p535_p1 = scmp.lt.s32.totalorder %s27_s25, %s27_s25 }
   0x5   :  { %p531_p0 = scmp.ne.s32.totalorder %s27_s25, %s530_s26  ;;  %p536_p2 = scmp.lt.s32.totalorder %s530_s26, %s530_s26 }
   0x7   :  { %p537_p3 = por %p536_p2, %p535_p1 }
   0x9   :  { %p538_p4 = pnand %p537_p3, %p531_p0 }
   0xb   :  { %541 = shalt.err (!%p538_p4)
}
   0xc   :  { %s589_s27 = smov 64   ;;  %s590_s28 = smov 4  }
   0xd   :  { %32 = dma.hbm_to_vmem [thread:$0]  %s671_s3, 1024, %s27_s25, [#allocation3], %s589_s27, %s589_s27, %s590_s28  }
   0xe   :  { %s591_s8 = smov [#allocation5]  }
   0xf   :  { %s40_s9 = sshll.u32 %s591_s8, 4  ;;  %s41_s9 = int_to_ptr.vmem [resolvable:$true] %s40_s9 }
  0x10   :  { %s550_s10 = scalar_lea.vmem %s41_s9, 1024  ;;  %p555_p6 = scmp.lt.s32.totalorder %s41_s9, %s41_s9 }
  0x11   :  { %p551_p5 = scmp.ne.s32.totalorder %s41_s9, %s550_s10  ;;  %p556_p7 = scmp.lt.s32.totalorder %s550_s10, %s550_s10 }
  0x13   :  { %p557_p8 = por %p556_p7, %p555_p6 }
  0x15   :  { %p558_p9 = pnand %p557_p8, %p551_p5 }
  0x17   :  { %561 = shalt.err (!%p558_p9)
}
  0x18   :  { %46 = dma.hbm_to_vmem [thread:$0]  %s673_s5, 1024, %s41_s9, [#allocation6], %s589_s27, %s589_s27, %s590_s28  }
  0x19   :  { %582 = dma.done.wait [#allocation3], 1024  }
  0x1a   :  { %583 = vsyncadd [#allocation3], 4294966272 }
  0x1b   :  { %584 = dma.done.wait [#allocation6], 1024  }
  0x1c   :  { %585 = vsyncadd [#allocation6], 4294966272  ;;  %v505_v0 = vld [vmem:[%s669_s1] sm:$0xff]   ;;  %v57_v2 = vld [vmem:[%s668_s0 + $0x8] sm:$0xff]  ;;  %vm77_vm0 = vcmask 130048  }
  0x1d   :  { %v56_v1 = vld [vmem:[%s668_s0] sm:$0xff]  ;;  %v58_v3 = vld [vmem:[%s668_s0 + $0x10] sm:$0xff]  ;;  %452 = vmatprep.subr.bf16.mxu0 %v505_v0  ;;  %v59_v5 = vld [vmem:[%s668_s0 + $0x18] sm:$0xff] }
  0x1e   :  { %v63_v4 = vpack.c.bf16 %v57_v2, %v56_v1  ;;  %453 = vmatpush3.bf16.msra.mxu0 %v505_v0  ;;  %v64_v6 = vpack.c.bf16 %v59_v5, %v58_v3  ;;  %v506_v7 = vld [vmem:[#allocation2 + $0x38] sm:$0xff]   ;;  %v507_v8 = vld [vmem:[#allocation2 + $0x30] sm:$0xff]   ;;  %v508_v9 = vld [vmem:[#allocation2 + $0x28] sm:$0xff]  }
  0x1f   :  { %458 = vmatprep.subr.bf16.mxu1 %v506_v7  ;;  %v509_v10 = vld [vmem:[#allocation2 + $0x20] sm:$0xff]   ;;  %v510_v11 = vld [vmem:[#allocation2 + $0x18] sm:$0xff]   ;;  %v511_v12 = vld [vmem:[#allocation2 + $0x10] sm:$0xff]  }
  0x20   :  { %454 = vmatprep.mubr.msk.bf16.mxu0 %vm77_vm0, %v63_v4  ;;  %459 = vmatpush3.bf16.msra.mxu1 %v506_v7  ;;  %v512_v13 = vld [vmem:[#allocation2 + $0x8] sm:$0xff]   ;;  %v513_v14 = vld [vmem:[#allocation2] sm:$0xff]   ;;  %v514_v15 = vld [vmem:[#allocation5 + $0x38] sm:$0xff]  }
  0x21   :  { %455 = vmatmul.mubr.msk.bf16.vlgmr.msra.gmra.mxu0 %vm77_vm0, %v64_v6  ;;  %460 = vmatprep.subr.bf16.mxu1 %v507_v8  ;;  %v515_v16 = vld [vmem:[#allocation5 + $0x30] sm:$0xff]   ;;  %v516_v17 = vld [vmem:[#allocation5 + $0x28] sm:$0xff]   ;;  %v517_v18 = vld [vmem:[#allocation5 + $0x20] sm:$0xff]  }
  0x22   :  { %478 = vmatprep.subr.bf16.mxu0 %v514_v15  ;;  %v518_v19 = vld [vmem:[#allocation5 + $0x18] sm:$0xff]   ;;  %v407_v22 = vld [vmem:[%s670_s2] ss:$0 sm:$0xff]  ;;  %v519_v35 = vld [vmem:[#allocation5 + $0x10] sm:$0xff]  }
  0x23   :  { %479 = vmatpush3.bf16.msra.mxu0 %v514_v15  ;;  %v520_v36 = vld [vmem:[#allocation5 + $0x8] sm:$0xff]   ;;  %v521_v37 = vld [vmem:[#allocation5] sm:$0xff]  }
  0x24   :  { %461 = vmatpush3.bf16.msra.mxu1 %v507_v8  ;;  %480 = vmatprep.subr.bf16.mxu0 %v515_v16  ;;  %v411_v40 = vld [vmem:[%s672_s4] ss:$0 sm:$0xff]  ;;  %s592_s4 = smov [#allocation7]  }
  0x25   :  { %462 = vmatprep.subr.bf16.mxu1 %v508_v9  ;;  %v420_v53 = vld [vmem:[%s674_s6] ss:$0 sm:$0xff]  ;;  %s394_s24 = sshll.u32 %s592_s4, 4  ;;  %s395_s24 = int_to_ptr.vmem [resolvable:$true] %s394_s24 }
  0x26   :  { %s562_s25 = scalar_lea.vmem %s395_s24, 512  ;;  %p567_p11 = scmp.lt.s32.totalorder %s395_s24, %s395_s24 }
  0x27   :  { %481 = vmatpush3.bf16.msra.mxu0 %v515_v16  ;;  %p563_p10 = scmp.ne.s32.totalorder %s395_s24, %s562_s25  ;;  %p568_p12 = scmp.lt.s32.totalorder %s562_s25, %s562_s25 }
  0x28   :  { %463 = vmatpush3.bf16.msra.mxu1 %v508_v9  ;;  %482 = vmatprep.subr.bf16.mxu0 %v516_v17 }
  0x29   :  { %464 = vmatprep.subr.bf16.mxu1 %v509_v10  ;;  %p569_p13 = por %p568_p12, %p567_p11 }
  0x2b   :  { %483 = vmatpush3.bf16.msra.mxu0 %v516_v17  ;;  %p570_p0 = pnand %p569_p13, %p563_p10 }
  0x2c   :  { %465 = vmatpush3.bf16.msra.mxu1 %v509_v10  ;;  %484 = vmatprep.subr.bf16.mxu0 %v517_v18 }
  0x2d   :  { %466 = vmatprep.subr.bf16.mxu1 %v510_v11 }
  0x2f   :  { %485 = vmatpush3.bf16.msra.mxu0 %v517_v18 }
  0x30   :  { %467 = vmatpush3.bf16.msra.mxu1 %v510_v11  ;;  %486 = vmatprep.subr.bf16.mxu0 %v518_v19 }
  0x31   :  { %468 = vmatprep.subr.bf16.mxu1 %v511_v12 }
  0x33   :  { %487 = vmatpush3.bf16.msra.mxu0 %v518_v19 }
  0x34   :  { %469 = vmatpush3.bf16.msra.mxu1 %v511_v12  ;;  %488 = vmatprep.subr.bf16.mxu0 %v519_v35 }
  0x35   :  { %470 = vmatprep.subr.bf16.mxu1 %v512_v13 }
  0x37   :  { %489 = vmatpush3.bf16.msra.mxu0 %v519_v35 }
  0x38   :  { %471 = vmatpush3.bf16.msra.mxu1 %v512_v13  ;;  %490 = vmatprep.subr.bf16.mxu0 %v520_v36 }
  0x39   :  { %472 = vmatprep.subr.bf16.mxu1 %v513_v14 }
  0x3b   :  { %491 = vmatpush3.bf16.msra.mxu0 %v520_v36 }
  0x3c   :  { %473 = vmatpush3.bf16.msra.mxu1 %v513_v14  ;;  %492 = vmatprep.subr.bf16.mxu0 %v521_v37 }
  0x3f   :  { %493 = vmatpush3.bf16.msra.mxu0 %v521_v37 }
  0xe1   :  { %v456_v20 = vpop.f32.mrf.mxu0 }
  0xe2   :  { %v127_v26 = vadd.f32 %v456_v20, %v407_v22 }
  0xe3   :  { %v118_v21 = vpop.f32.mrf.mxu0 }
  0xe4   :  { %v119_v24 = vadd.f32 %v407_v22, %v118_v21  ;;  %v135_v32 = vmax.f32 %v127_v26, 0.0 }
  0xe5   :  { %v457_v23 = vpop.f32.mrf.mxu0 }
  0xe6   :  { %v130_v25 = vadd.f32 %v457_v23, %v407_v22  ;;  %v133_v30 = vmax.f32 %v119_v24, 0.0 }
  0xe7   :  { %v121_v27 = vpop.f32.mrf.mxu0 }
  0xe8   :  { %v122_v28 = vadd.f32 %v407_v22, %v121_v27  ;;  %v136_v29 = vmax.f32 %v130_v25, 0.0 }
  0xea   :  { %v134_v31 = vmax.f32 %v122_v28, 0.0  ;;  %v155_v34 = vpack.c.bf16 %v136_v29, %v135_v32 }
  0xec   :  { %v154_v33 = vpack.c.bf16 %v134_v31, %v133_v30 }
  0xee   :  { %474 = vmatprep.mubr.bf16.mxu1 %v154_v33 }
  0xef   :  { %475 = vmatmul.mubr.bf16.vlgmr.msra.gmra.mxu1 %v155_v34 }
 0x1af   :  { %v476_v38 = vpop.f32.mrf.mxu1 }
 0x1b0   :  { %v253_v44 = vadd.f32 %v476_v38, %v411_v40 }
 0x1b1   :  { %v244_v39 = vpop.f32.mrf.mxu1 }
 0x1b2   :  { %v245_v42 = vadd.f32 %v411_v40, %v244_v39  ;;  %v261_v50 = vmax.f32 %v253_v44, 0.0 }
 0x1b3   :  { %v477_v41 = vpop.f32.mrf.mxu1 }
 0x1b4   :  { %v256_v43 = vadd.f32 %v477_v41, %v411_v40  ;;  %v259_v48 = vmax.f32 %v245_v42, 0.0 }
 0x1b5   :  { %v247_v45 = vpop.f32.mrf.mxu1 }
 0x1b6   :  { %v248_v46 = vadd.f32 %v411_v40, %v247_v45  ;;  %v262_v47 = vmax.f32 %v256_v43, 0.0 }
 0x1b8   :  { %v260_v49 = vmax.f32 %v248_v46, 0.0  ;;  %v281_v52 = vpack.c.bf16 %v262_v47, %v261_v50 }
 0x1ba   :  { %v280_v51 = vpack.c.bf16 %v260_v49, %v259_v48 }
 0x1bc   :  { %494 = vmatprep.mubr.bf16.mxu0 %v280_v51 }
 0x1bd   :  { %495 = vmatmul.mubr.bf16.vlgmr.msra.gmra.mxu0 %v281_v52 }
 0x27d   :  { %v496_v54 = vpop.f32.mrf.mxu0 }
 0x27e   :  { %v379_v55 = vadd.f32 %v496_v54, %v420_v53 }
 0x27f   :  { %v370_v56 = vpop.f32.mrf.mxu0 }
 0x280   :  { %387 = vst [vmem:[#allocation7 + $0x10] sm:$0xff] %v379_v55  ;;  %v371_v57 = vadd.f32 %v420_v53, %v370_v56 }
 0x281   :  { %v497_v58 = vpop.f32.mrf.mxu0 }
 0x282   :  { %385 = vst [vmem:[#allocation7] sm:$0xff] %v371_v57  ;;  %v382_v59 = vadd.f32 %v497_v58, %v420_v53 }
 0x283   :  { %v373_v60 = vpop.f32.mrf.mxu0 }
 0x284   :  { %388 = vst [vmem:[#allocation7 + $0x18] sm:$0xff] %v382_v59  ;;  %v374_v61 = vadd.f32 %v420_v53, %v373_v60 }
 0x286   :  { %386 = vst [vmem:[#allocation7 + $0x8] sm:$0xff] %v374_v61 }
 0x287   :  { %573 = shalt.err (!%p570_p0)
}
 0x288   :  { %s593_s6 = smov 128   ;;  %s594_s26 = smov 8  }
 0x289   :  { %400 = dma.vmem_to_hbm [thread:$0]  %s395_s24, 512, %s675_s7, [#allocation4], %s593_s6, %s593_s6, %s594_s26  }
 0x28a   :  { %586 = dma.done.wait [#allocation4], 512  }
 0x28b   :  { %587 = vsyncadd [#allocation4], 4294966784 }
 0x28c   :  { %404 = vsyncpa [#allocation3], 1 }
 0x28d   :  { %405 = vsyncpa [#allocation6], 1 }
 0x28e   :  { %406 = vsyncpa [#allocation4], 1 }

</bundles_post_ra>
